<compile_context>
chip_gen: v6e
topology: v6e:2x2x1
jax: 0.10.0
libtpu: 0.0.40
codegen_flags: <defaults>
</compile_context>

<pallas_src>
import functools
from math import sqrt

import jax
import jax.numpy as jnp
from jax.experimental import pallas as pl
from jax.experimental.pallas import tpu as pltpu


def _gcn2_kernel(adj_ref, x_ref, w1_ref, b1_ref, w2_ref, b2_ref, out_ref, *,
                 matmul_dtype):
    f32 = jnp.float32
    a = adj_ref[...]                                      # (N, N) A_hat, f32

    # Self-loop-inclusive in-degree of target nodes; rsqrt lands on the EUP
    # slot (free relative to the matmuls).
    d = jax.lax.rsqrt(jnp.sum(a, axis=-1, keepdims=True))  # (N, 1)

    # One-sided pre-scaled adjacency, computed once and reused by both layers.
    #   D^-1/2 A_hat D^-1/2 (X W)  ==  (D^-1/2 A_hat) @ ((d * X) @ W)
    # No (N,1)->(1,N) transpose and no per-layer VPU scaling between matmuls.
    a_left = (d * a).astype(matmul_dtype)                 # (N, N)

    w1 = w1_ref[...].astype(matmul_dtype)
    w2 = w2_ref[...].astype(matmul_dtype)

    # --- layer 1: GCNConv(in, hidden) -> bias -> ReLU ---------------------
    xs = (d * x_ref[...]).astype(matmul_dtype)            # (N, Cin)
    z1 = jnp.dot(xs, w1, preferred_element_type=f32)      # MXU, f32 acc
    h = jnp.dot(a_left, z1.astype(matmul_dtype),
                preferred_element_type=f32) + b1_ref[...]  # MXU, f32 acc
    h = jnp.maximum(h, 0.0)                                # ReLU
    # dropout(p=0.5) is identity in eval mode.

    # --- layer 2: GCNConv(hidden, out) -> bias -----------------------------
    # The d scaling of layer 2's input fuses into the same VPU pass as the
    # ReLU/bias above (no extra pass on the MXU dependency chain).
    hs = (d * h).astype(matmul_dtype)                      # (N, Chid)
    z2 = jnp.dot(hs, w2, preferred_element_type=f32)       # MXU, f32 acc
    out = jnp.dot(a_left, z2.astype(matmul_dtype),
                  preferred_element_type=f32) + b2_ref[...]  # MXU, f32 acc
    out_ref[...] = out.astype(out_ref.dtype)


def _build_adjacency(edge_index, num_nodes):
    """Dense A_hat matching PyG gcn_norm's add_remaining_self_loops.

    Edge (src -> dst) lands at row dst, col src (so a row-sum is the
    self-loop-inclusive in-degree).  Nodes without an explicit self-loop get
    one of weight 1; existing explicit self-loops keep their summed weight.
    Only an O(N) diagonal scatter-max on top of the edge scatter -- no extra
    NxN elementwise pass.
    """
    src, dst = edge_index[0], edge_index[1]
    adj = jnp.zeros((num_nodes, num_nodes), jnp.float32).at[dst, src].add(1.0)
    idx = jnp.arange(num_nodes)
    return adj.at[idx, idx].max(jnp.ones((num_nodes,), jnp.float32))


def gnn_forward(x, edge_index, params, *, matmul_dtype=jnp.bfloat16):
    """Batched 2-layer GCN forward (eval mode).

    x:          (B, N, Cin) or (N, Cin) f32 node features
    edge_index: (B, 2, E)  or (2, E)  int32 (src, dst) pairs
    """
    squeeze = x.ndim == 2
    if squeeze:
        x = x[None]
        edge_index = edge_index[None]
    B, N, c_in = x.shape
    c_hid = params["w1"].shape[1]
    c_out = params["w2"].shape[1]

    adj = jax.vmap(lambda ei: _build_adjacency(ei, N))(edge_index)  # (B,N,N)

    flops = 2 * B * (N * c_in * c_hid + N * N * c_hid
                     + N * c_hid * c_out + N * N * c_out)
    bytes_accessed = 4 * (B * N * N + B * N * c_in + c_in * c_hid + c_hid
                          + c_hid * c_out + c_out + B * N * c_out)
    cost = pl.CostEstimate(flops=flops, transcendentals=B * N,
                           bytes_accessed=bytes_accessed)

    grid_spec = pltpu.PrefetchScalarGridSpec(
        num_scalar_prefetch=0,
        grid=(B,),                                    # one graph per grid step
        in_specs=[
            pl.BlockSpec((None, N, N), lambda b: (b, 0, 0)),      # A_hat
            pl.BlockSpec((None, N, c_in), lambda b: (b, 0, 0)),   # features
            pl.BlockSpec((c_in, c_hid), lambda b: (0, 0)),        # W1 (shared)
            pl.BlockSpec((1, c_hid), lambda b: (0, 0)),           # b1
            pl.BlockSpec((c_hid, c_out), lambda b: (0, 0)),       # W2 (shared)
            pl.BlockSpec((1, c_out), lambda b: (0, 0)),           # b2
        ],
        out_specs=pl.BlockSpec((None, N, c_out), lambda b: (b, 0, 0)),
    )

    out = pl.pallas_call(
        functools.partial(_gcn2_kernel, matmul_dtype=matmul_dtype),
        out_shape=jax.ShapeDtypeStruct((B, N, c_out), jnp.float32),
        grid_spec=grid_spec,
        compiler_params=pltpu.CompilerParams(
            dimension_semantics=("parallel",),        # batch is independent
            vmem_limit_bytes=32 * 1024 * 1024),
        cost_estimate=cost,
    )(adj, x, params["w1"], params["b1"], params["w2"], params["b2"])
    return out[0] if squeeze else out


def _reference(x, edge_index, params):
    """Pure-JAX f32 reference of the PyTorch/PyG eval-mode forward."""
    N = x.shape[0]
    hi = jax.lax.Precision.HIGHEST
    a = _build_adjacency(edge_index, N)
    d = a.sum(-1) ** -0.5
    a_norm = d[:, None] * a * d[None, :]
    h = jnp.dot(a_norm, jnp.dot(x, params["w1"], precision=hi),
                precision=hi) + params["b1"]
    h = jnp.maximum(h, 0.0)                           # ReLU; dropout identity
    out = jnp.dot(a_norm, jnp.dot(h, params["w2"], precision=hi),
                  precision=hi) + params["b2"]
    return out


def init_params(key, c_in, c_hid, c_out):
    k1, k2 = jax.random.split(key)
    f32 = jnp.float32
    return {
        "w1": ((1.0 / sqrt(c_in)) * jax.random.normal(k1, (c_in, c_hid))).astype(f32),
        "b1": jnp.zeros((1, c_hid), f32),
        "w2": ((1.0 / sqrt(c_hid)) * jax.random.normal(k2, (c_hid, c_out))).astype(f32),
        "b2": jnp.zeros((1, c_out), f32),
    }


if __name__ == "__main__":
    B, N, E = 4, 64, 256                  # graphs per call, nodes, edges/graph
    c_in, c_hid, c_out = 32, 128, 128     # lane-dense hidden / output dims

    key = jax.random.PRNGKey(0)
    k_x, k_e, k_p = jax.random.split(key, 3)
    x = jax.random.normal(k_x, (B, N, c_in), jnp.float32)
    edge_index = jax.random.randint(k_e, (B, 2, E), 0, N, dtype=jnp.int32)
    params = init_params(k_p, c_in, c_hid, c_out)

    ref = jax.vmap(lambda xx, ee: _reference(xx, ee, params))(x, edge_index)

    # Production path: bf16 MXU operands, f32 accumulation.
    out_bf16 = jax.block_until_ready(gnn_forward(x, edge_index, params))
    assert out_bf16.shape == (B, N, c_out)
    assert jnp.allclose(out_bf16, ref, atol=3e-2, rtol=3e-2), \
        "bf16-operand path mismatch vs f32 reference"

    # f32-operand path matches the PyTorch f32 forward to tight tolerance.
    out_f32 = jax.block_until_ready(
        gnn_forward(x, edge_index, params, matmul_dtype=jnp.float32))
    assert jnp.allclose(out_f32, ref, atol=1e-4, rtol=1e-3), \
        "f32 path mismatch vs reference"

    # Unbatched call (original module signature) also works.
    out_single = jax.block_until_ready(gnn_forward(x[0], edge_index[0], params))
    assert out_single.shape == (N, c_out)
    assert jnp.allclose(out_single, ref[0], atol=3e-2, rtol=3e-2)

    print("KERNEL_OK")
</pallas_src>

<mosaic_0001>
module attributes {stable_mosaic.version = 11 : i64} {
  func.func @_gcn2_kernel(%arg0: i32, %arg1: memref<1x64x64xf32, #tpu.memory_space<vmem>>, %arg2: memref<1x64x32xf32, #tpu.memory_space<vmem>>, %arg3: memref<32x128xf32, #tpu.memory_space<vmem>>, %arg4: memref<1x128xf32, #tpu.memory_space<vmem>>, %arg5: memref<128x128xf32, #tpu.memory_space<vmem>>, %arg6: memref<1x128xf32, #tpu.memory_space<vmem>>, %arg7: memref<1x64x128xf32, #tpu.memory_space<vmem>>) attributes {dimension_semantics = [#tpu.dimension_semantics<parallel>], iteration_bounds = array<i64: 4>, scalar_prefetch = 0 : i64, scratch_operands = 0 : i64, tpu.core_type = #tpu.core_type<tc>, window_params = [{transform_indices = @transform_0, window_bounds = array<i64: 1, 64, 64>}, {transform_indices = @transform_1, window_bounds = array<i64: 1, 64, 32>}, {pipeline_mode = #tpu.pipeline_mode<synchronous>, transform_indices = @transform_2, window_bounds = array<i64: 32, 128>}, {pipeline_mode = #tpu.pipeline_mode<synchronous>, transform_indices = @transform_3, window_bounds = array<i64: 1, 128>}, {pipeline_mode = #tpu.pipeline_mode<synchronous>, transform_indices = @transform_4, window_bounds = array<i64: 128, 128>}, {pipeline_mode = #tpu.pipeline_mode<synchronous>, transform_indices = @transform_5, window_bounds = array<i64: 1, 128>}, {transform_indices = @transform_6, window_bounds = array<i64: 1, 64, 128>}]} {
    %c0 = arith.constant 0 : index
    %c0_0 = arith.constant 0 : index
    %c0_1 = arith.constant 0 : index
    %0 = vector.load %arg1[%c0, %c0_0, %c0_1] : memref<1x64x64xf32, #tpu.memory_space<vmem>>, vector<1x64x64xf32>
    %1 = vector.shape_cast %0 : vector<1x64x64xf32> to vector<64x64xf32>
    %cst = arith.constant dense<0.000000e+00> : vector<64xf32>
    %2 = vector.multi_reduction <add>, %1, %cst [1] : vector<64x64xf32> to vector<64xf32>
    %3 = vector.shape_cast %2 : vector<64xf32> to vector<64x1xf32>
    %4 = math.rsqrt %3 : vector<64x1xf32>
    %5 = vector.broadcast %4 : vector<64x1xf32> to vector<64x64xf32>
    %6 = arith.mulf %5, %1 : vector<64x64xf32>
    %7 = arith.truncf %6 : vector<64x64xf32> to vector<64x64xbf16>
    %c0_2 = arith.constant 0 : index
    %c0_3 = arith.constant 0 : index
    %8 = vector.load %arg3[%c0_2, %c0_3] : memref<32x128xf32, #tpu.memory_space<vmem>>, vector<32x128xf32>
    %9 = arith.truncf %8 : vector<32x128xf32> to vector<32x128xbf16>
    %c0_4 = arith.constant 0 : index
    %c0_5 = arith.constant 0 : index
    %10 = vector.load %arg5[%c0_4, %c0_5] : memref<128x128xf32, #tpu.memory_space<vmem>>, vector<128x128xf32>
    %11 = arith.truncf %10 : vector<128x128xf32> to vector<128x128xbf16>
    %c0_6 = arith.constant 0 : index
    %c0_7 = arith.constant 0 : index
    %c0_8 = arith.constant 0 : index
    %12 = vector.load %arg2[%c0_6, %c0_7, %c0_8] : memref<1x64x32xf32, #tpu.memory_space<vmem>>, vector<1x64x32xf32>
    %13 = vector.shape_cast %12 : vector<1x64x32xf32> to vector<64x32xf32>
    %14 = vector.broadcast %4 : vector<64x1xf32> to vector<64x32xf32>
    %15 = arith.mulf %14, %13 : vector<64x32xf32>
    %16 = arith.truncf %15 : vector<64x32xf32> to vector<64x32xbf16>
    %cst_9 = arith.constant dense<0.000000e+00> : vector<64x128xf32>
    %17 = tpu.matmul %16, %9, %cst_9 {dimension_numbers = #tpu.dot_dimension_numbers<[1], [0], [0], [1], [0, 0, 1, 1], [], []>} : vector<64x32xbf16>, vector<32x128xbf16>, vector<64x128xf32> -> vector<64x128xf32>
    %18 = arith.truncf %17 : vector<64x128xf32> to vector<64x128xbf16>
    %cst_10 = arith.constant dense<0.000000e+00> : vector<64x128xf32>
    %19 = tpu.matmul %7, %18, %cst_10 {dimension_numbers = #tpu.dot_dimension_numbers<[1], [0], [0], [1], [0, 0, 1, 1], [], []>} : vector<64x64xbf16>, vector<64x128xbf16>, vector<64x128xf32> -> vector<64x128xf32>
    %c0_11 = arith.constant 0 : index
    %c0_12 = arith.constant 0 : index
    %20 = vector.load %arg4[%c0_11, %c0_12] : memref<1x128xf32, #tpu.memory_space<vmem>>, vector<1x128xf32>
    %21 = vector.broadcast %20 : vector<1x128xf32> to vector<64x128xf32>
    %22 = arith.addf %19, %21 : vector<64x128xf32>
    %cst_13 = arith.constant 0.000000e+00 : f32
    %23 = vector.broadcast %cst_13 : f32 to vector<64x128xf32>
    %24 = arith.maximumf %22, %23 : vector<64x128xf32>
    %25 = vector.broadcast %4 : vector<64x1xf32> to vector<64x128xf32>
    %26 = arith.mulf %25, %24 : vector<64x128xf32>
    %27 = arith.truncf %26 : vector<64x128xf32> to vector<64x128xbf16>
    %cst_14 = arith.constant dense<0.000000e+00> : vector<64x128xf32>
    %28 = tpu.matmul %27, %11, %cst_14 {dimension_numbers = #tpu.dot_dimension_numbers<[1], [0], [0], [1], [0, 0, 1, 1], [], []>} : vector<64x128xbf16>, vector<128x128xbf16>, vector<64x128xf32> -> vector<64x128xf32>
    %29 = arith.truncf %28 : vector<64x128xf32> to vector<64x128xbf16>
    %cst_15 = arith.constant dense<0.000000e+00> : vector<64x128xf32>
    %30 = tpu.matmul %7, %29, %cst_15 {dimension_numbers = #tpu.dot_dimension_numbers<[1], [0], [0], [1], [0, 0, 1, 1], [], []>} : vector<64x64xbf16>, vector<64x128xbf16>, vector<64x128xf32> -> vector<64x128xf32>
    %c0_16 = arith.constant 0 : index
    %c0_17 = arith.constant 0 : index
    %31 = vector.load %arg6[%c0_16, %c0_17] : memref<1x128xf32, #tpu.memory_space<vmem>>, vector<1x128xf32>
    %32 = vector.broadcast %31 : vector<1x128xf32> to vector<64x128xf32>
    %33 = arith.addf %30, %32 : vector<64x128xf32>
    %c0_18 = arith.constant 0 : index
    %c0_19 = arith.constant 0 : index
    %c0_20 = arith.constant 0 : index
    %34 = vector.load %arg7[%c0_18, %c0_19, %c0_20] : memref<1x64x128xf32, #tpu.memory_space<vmem>>, vector<1x64x128xf32>
    %35 = vector.shape_cast %34 : vector<1x64x128xf32> to vector<64x128xf32>
    %36 = vector.shape_cast %33 : vector<64x128xf32> to vector<1x64x128xf32>
    tpu.vector_store %arg7[%c0_18, %c0_19, %c0_20], %36 {strides = array<i32>} : memref<1x64x128xf32, #tpu.memory_space<vmem>>, vector<1x64x128xf32>,
    return
  }
  func.func @transform_0(%arg0: i32) -> (i32, i32, i32) {
    %c0_i32 = arith.constant 0 : i32
    %c0_i32_0 = arith.constant 0 : i32
    %c0_i32_1 = arith.constant 0 : i32
    return %arg0, %c0_i32, %c0_i32_0 : i32, i32, i32
  }
  func.func @transform_1(%arg0: i32) -> (i32, i32, i32) {
    %c0_i32 = arith.constant 0 : i32
    %c0_i32_0 = arith.constant 0 : i32
    %c0_i32_1 = arith.constant 0 : i32
    return %arg0, %c0_i32, %c0_i32_0 : i32, i32, i32
  }
  func.func @transform_2(%arg0: i32) -> (i32, i32) {
    %c0_i32 = arith.constant 0 : i32
    %c0_i32_0 = arith.constant 0 : i32
    %c0_i32_1 = arith.constant 0 : i32
    return %c0_i32, %c0_i32_0 : i32, i32
  }
  func.func @transform_3(%arg0: i32) -> (i32, i32) {
    %c0_i32 = arith.constant 0 : i32
    %c0_i32_0 = arith.constant 0 : i32
    %c0_i32_1 = arith.constant 0 : i32
    return %c0_i32, %c0_i32_0 : i32, i32
  }
  func.func @transform_4(%arg0: i32) -> (i32, i32) {
    %c0_i32 = arith.constant 0 : i32
    %c0_i32_0 = arith.constant 0 : i32
    %c0_i32_1 = arith.constant 0 : i32
    return %c0_i32, %c0_i32_0 : i32, i32
  }
  func.func @transform_5(%arg0: i32) -> (i32, i32) {
    %c0_i32 = arith.constant 0 : i32
    %c0_i32_0 = arith.constant 0 : i32
    %c0_i32_1 = arith.constant 0 : i32
    return %c0_i32, %c0_i32_0 : i32, i32
  }
  func.func @transform_6(%arg0: i32) -> (i32, i32, i32) {
    %c0_i32 = arith.constant 0 : i32
    %c0_i32_0 = arith.constant 0 : i32
    %c0_i32_1 = arith.constant 0 : i32
    return %arg0, %c0_i32, %c0_i32_0 : i32, i32, i32
  }
}

</mosaic_0001>

<bundles_post_ra>
// kernel: tpu_custom_call.1
= control target key start
LH: loop header
LB: loop body
LE: loop exit
PB: predicated region body
PF: predicated region fallthrough
CT: control target
= control target key end

     0   :  { %11 = vsyncpa [#allocation3], 0  ;;  %s1460_s0 = inlined_call_operand.vmem [shape: f32[4,64,64], index: 0, kind: input, shape index: {}]   ;;  %s1461_s1 = inlined_call_operand.vmem [shape: f32[4,64,32], index: 1, kind: input, shape index: {}]   ;;  %s1462_s2 = inlined_call_operand.hbm [shape: f32[32,128], index: 2, kind: input, shape index: {}]   ;;  %s1463_s3 = inlined_call_operand.vmem [shape: f32[1,128], index: 3, kind: input, shape index: {}]   ;;  %s1464_s4 = inlined_call_operand.vmem [shape: f32[128,128], index: 4, kind: input, shape index: {}]   ;;  %s1465_s5 = inlined_call_operand.vmem [shape: f32[1,128], index: 5, kind: input, shape index: {}]   ;;  %s1466_s6 = inlined_call_operand.hbm [shape: f32[4,64,128], index: 6, kind: output, shape index: {}]  }
   0x1   :  { %12 = vsyncpa [#allocation4], 0 }
   0x2   :  { %14 = vsyncpa [#allocation4 + $0x1], 0  ;;  %s1162_s21 = smov 0   ;;  %s1164_s22 = smov 0  }
   0x3   :  { %s1166_s23 = smov 0   ;;  %s1168_s24 = smov 0  }
   0x4 LB: > { %s1183_s25 = sadd.s32 4294967295, %s1119_s24   ;;  %s824_s26 = sadd.s32 4294967294, %s1119_s24   ;;  %s1119_s24 = sphi %s1168_s24, %s1474_s24   ;;  %s1115_s23 = sphi %s1166_s23, %s1473_s23   ;;  %s1111_s22 = sphi %s1164_s22, %s1472_s22   ;;  %s1107_s21 = sphi %s1162_s21, %s1471_s21  }
   0x5   : > { %s1187_s27 = sadd.s32 1, %s1119_s24   ;;  %s163_s28 = sadd.s32 1, %s1115_s23 }
   0x6   : > { %s160_s29 = ssub.s32 %s1119_s24, %s1187_s27  ;;  %p173_p0 = scmp.ne.s32.totalorder %s1115_s23, %s1111_s22 }
   0x7   : > { %p161_p1 = scmp.eq.s32.totalorder %s160_s29, 0  ;;  %p174_p2 = scmp.eq.s32.totalorder %s1183_s25, 3 }
   0x8   : > { %p179_p3 = scmp.ne.s32.totalorder %s1111_s22, %s1107_s21  ;;  %p180_p4 = scmp.eq.s32.totalorder %s824_s26, 3 }
   0x9   : > { %s1198_s30 = scalar_select %p161_p1, %s1115_s23, %s163_s28  }
   0xa   : > { %p1200_p5 = por %p174_p2, %p173_p0  ;;  %p1204_p6 = por %p180_p4, %p179_p3 }
   0xb   : > { %p825_p7 = scmp.ge.s32.totalorder %s1119_s24, 1  ;;  %p187_p8 = scmp.lt.s32.totalorder %s1119_s24, 5 }
   0xc   : > { %s1468_s8 = scalar_select %p1204_p6, 1, 0 }
   0xd   : > { %p973_p9 = scmp.eq.s32.totalorder %s1183_s25, 0  ;;  %p1211_p10 = pnand %p825_p7, %p187_p8 }
   0xe   : > { %s1121_s10 = smov [#allocation2]  }
   0xf   : > { %s199_s11 = sshll.u32 %s1121_s10, 4  ;;  %p965_p11 = pneg %p1211_p10  ;;  %s200_s11 = int_to_ptr.vmem [resolvable:$true] %s199_s11 }
  0x10   : > { %s1040_s12 = scalar_lea.vmem %s200_s11, 512  ;;  %p1048_p3 = scmp.lt.s32.totalorder %s200_s11, %s200_s11 }
  0x11   : > { %p966_p12 = pnand %p973_p9, %p965_p11  ;;  %p1041_p0 = scmp.ne.s32.totalorder %s200_s11, %s1040_s12 }
  0x12   : > { %p1049_p4 = scmp.lt.s32.totalorder %s1040_s12, %s1040_s12 }
  0x13   : > { %p1031_p13 = pneg %p966_p12 }
  0x14   : > { %p1050_p6 = por %p1049_p4, %p1048_p3 }
  0x15   : > { %p1043_p1 = pnand %p1041_p0, %p1031_p13 }
  0x17   : > { %p1044_p2 = pneg %p1043_p1 }
  0x19   : > { %p1051_p7 = pnand %p1050_p6, %p1044_p2 }
  0x1b   : > { %1054 = shalt.err (!%p1051_p7)
}
  0x1c   : > { %s1122_s13 = smov 128   ;;  %s1123_s14 = smov 8  }
  0x1d   : > { %968 = dma.hbm_to_vmem [thread:$0]  (!%p966_p12), %s1462_s2, 512, %s200_s11, [#allocation3], %s1122_s13, %s1122_s13, %s1123_s14  }
  0x1e   : > { %240 = sbr.rel (%p1211_p10) target bundleno = 1083 (0x43b), region = 44 }
  0x23   : > { %1098 = dma.done.wait (%p973_p9), [#allocation3], 512  }
  0x24   : > { %1100 = vsyncadd (%p973_p9), [#allocation3], 4294966784  ;;  %p275_p8 = scmp.lt.s32.totalorder %s1183_s25, 3  ;;  %vm294_vm0 = vcmask 523264   ;;  %v341_v16 = vld [vmem:[#allocation2 + $0x10] sm:$0xff]  ;;  %v342_v17 = vld [vmem:[#allocation2 + $0x18] sm:$0xff] }
  0x25   : > { %v339_v18 = vld [vmem:[#allocation2] sm:$0xff]  ;;  %v344_v19 = vpack.c.bf16 %v342_v17, %v341_v16  ;;  %v340_v20 = vld [vmem:[#allocation2 + $0x8] sm:$0xff]  ;;  %vm389_vm1 = vcmask 261120   ;;  %v359_v61 = vld [vmem:[%s1464_s4 + $0x70] sm:$0xff]  ;;  %s272_s14 = sand.u32 1, %s1111_s22   ;;  %s856_s20 = sshll.u32 %s1183_s25, 10 }
  0x26   : > { %s1230_s17 = scalar_select %p275_p8, %s1183_s25, 3  ;;  %v343_v21 = vpack.c.bf16 %v340_v20, %v339_v18  ;;  %v360_v62 = vld [vmem:[%s1464_s4 + $0x78] sm:$0xff]  ;;  %v357_v63 = vld [vmem:[%s1464_s4 + $0x60] sm:$0xff] }
  0x27   : > { %891 = vmatprep.subr.bf16.mxu0 %v344_v19  ;;  %s830_s15 = sshll.u32 %s272_s14, 6  ;;  %s1416_s29 = scalar_lea.hbm %s1466_s6, %s856_s20 }
  0x28   : > { %s854_s18 = sshll.u32 %s1230_s17, 6  ;;  %892 = vmatpush3.bf16.msra.mxu0 %v344_v19  ;;  %s1124_s10 = smov [#allocation5]  }
  0x29   : > { %s279_s26 = scalar_lea.vmem %s1460_s0, %s854_s18  ;;  %893 = vmatprep.subr.bf16.mxu0 %v343_v21  ;;  %s1269_s9 = scalar_lea.vmem %s1461_s1, %s854_s18 }
  0x2a   : > { %v1238_v0 = vld [vmem:[%s279_s26 + $0x10] sm:$0xff]  ;;  %v286_v1 = vld [vmem:[%s279_s26] sm:$0xff]  ;;  %v1240_v2 = vld [vmem:[%s279_s26 + $0x18] sm:$0xff]  ;;  %s274_s18 = scalar_lea.vmem [#allocation5], %s830_s15  ;;  %s1059_s11 = sshll.u32 %s1124_s10, 4  ;;  %s1060_s11 = int_to_ptr.vmem [resolvable:$false] %s1059_s11 }
  0x2b   : > { %v301_v3 = vsel %vm294_vm0, %v1238_v0, 0.0  ;;  %v295_v4 = vsel %vm294_vm0, %v286_v1, 0.0  ;;  %v287_v5 = vld [vmem:[%s279_s26 + $0x8] sm:$0xff]  ;;  %v304_v6 = vsel %vm294_vm0, %v1240_v2, 0.0  ;;  %v1250_v9 = vld [vmem:[%s279_s26 + $0x20] sm:$0xff]  ;;  %v1256_v12 = vld [vmem:[%s279_s26 + $0x38] sm:$0xff] }
  0x2c   : > { %302 = vadd.xlane.f32.xlu1 %v301_v3  ;;  %296 = vadd.xlane.f32.xlu0 %v295_v4  ;;  %v298_v7 = vsel %vm294_vm0, %v287_v5, 0.0  ;;  %v1248_v8 = vld [vmem:[%s279_s26 + $0x28] sm:$0xff]  ;;  %v307_v11 = vsel %vm294_vm0, %v1250_v9, 0.0  ;;  %v1258_v13 = vld [vmem:[%s279_s26 + $0x30] sm:$0xff]  ;;  %v316_v14 = vsel %vm294_vm0, %v1256_v12, 0.0  ;;  %v372_v32 = vld [vmem:[%s1269_s9 + $0x18] sm:$0xff] }
  0x2d   : > { %v310_v10 = vsel %vm294_vm0, %v1248_v8, 0.0  ;;  %v313_v15 = vsel %vm294_vm0, %v1258_v13, 0.0  ;;  %894 = vmatpush3.bf16.msra.mxu0 %v343_v21  ;;  %v371_v31 = vld [vmem:[%s1269_s9 + $0x10] sm:$0xff]  ;;  %v369_v34 = vld [vmem:[%s1269_s9] sm:$0xff]  ;;  %v370_v35 = vld [vmem:[%s1269_s9 + $0x8] sm:$0xff]  ;;  %s738_s19 = sshll.u32 %s274_s18, 4  ;;  %s1411_s19 = int_to_ptr.vmem [resolvable:$true] %s738_s19 }
  0x2e   : > { %v374_v44 = vld [vmem:[%s1269_s9 + $0x28] sm:$0xff]  ;;  %v373_v46 = vld [vmem:[%s1269_s9 + $0x20] sm:$0xff]  ;;  %v376_v53 = vld [vmem:[%s1269_s9 + $0x38] sm:$0xff]  ;;  %s1055_s25 = scalar_lea.vmem %s1411_s19, 1024  ;;  %s1061_s12 = scalar_lea.vmem %s1060_s11, 2048 }
  0x2f   : > { %v375_v54 = vld [vmem:[%s1269_s9 + $0x30] sm:$0xff]  ;;  %v358_v3 = vld [vmem:[%s1464_s4 + $0x68] sm:$0xff]  ;;  %s1420_s9 = scalar_lea.sflag [#allocation4], %s272_s14  ;;  %p1056_p6 = scmp.ne.s32.totalorder %s1411_s19, %s1055_s25 }
  0x30   : > { %305 = vadd.xlane.f32.xlu1 %v304_v6  ;;  %299 = vadd.xlane.f32.xlu0 %v298_v7  ;;  %v367_v4 = vpack.c.bf16 %v358_v3, %v357_v63  ;;  %v356_v6 = vld [vmem:[%s1464_s4 + $0x58] sm:$0xff]  ;;  %p1062_p11 = scmp.lt.s32.totalorder %s1411_s19, %s1060_s11  ;;  %p1063_p12 = scmp.lt.s32.totalorder %s1061_s12, %s1055_s25 }
  0x31   : > { %p1057_p9 = pnand %p1056_p6, %p1200_p5 }
  0x32   : > { %p1064_p13 = por %p1063_p12, %p1062_p11 }
  0x33   : > { %p1058_p10 = pneg %p1057_p9 }
  0x34   : > { %311 = vadd.xlane.f32.xlu1 %v310_v10  ;;  %308 = vadd.xlane.f32.xlu0 %v307_v11  ;;  %v353_v10 = vld [vmem:[%s1464_s4 + $0x40] sm:$0xff]  ;;  %v354_v11 = vld [vmem:[%s1464_s4 + $0x48] sm:$0xff] }
  0x35   : > { %p1065_p0 = pnand %p1064_p13, %p1058_p10 }
  0x38   : > { %317 = vadd.xlane.f32.xlu1 %v316_v14  ;;  %314 = vadd.xlane.f32.xlu0 %v313_v15  ;;  %v365_v14 = vpack.c.bf16 %v354_v11, %v353_v10 }
  0xb5   : > { %v303_v22 = vpop.xlane.xlu1 %302  ;;  %v297_v23 = vpop.xlane.xlu0 %296 }
  0xb6   : > { %1013 = vrsqrt.f32 %v303_v22 }
  0xb7   : > { %1015 = vrsqrt.f32 %v297_v23 }
  0xb9   : > { %v306_v24 = vpop.xlane.xlu1 %305  ;;  %v300_v25 = vpop.xlane.xlu0 %299 }
  0xba   : > { %1017 = vrsqrt.f32 %v306_v24 }
  0xbb   : > { %1019 = vrsqrt.f32 %v300_v25 }
  0xbd   : > { %v312_v26 = vpop.xlane.xlu1 %311  ;;  %v309_v27 = vpop.xlane.xlu0 %308 }
  0xbe   : > { %1021 = vrsqrt.f32 %v312_v26 }
  0xbf   : > { %1023 = vrsqrt.f32 %v309_v27 }
  0xc1   : > { %v318_v28 = vpop.xlane.xlu1 %317  ;;  %v315_v29 = vpop.xlane.xlu0 %314 }
  0xc2   : > { %1025 = vrsqrt.f32 %v318_v28 }
  0xc3   : > { %1027 = vrsqrt.f32 %v315_v29  ;;  %v1271_v30 = vpop.eup %1013 }
  0xc4   : > { %v1275_v33 = vpop.eup %1015  ;;  %v379_v38 = vmul.f32 %v1271_v30, %v371_v31  ;;  %v329_v31 = vmul.f32 %v1271_v30, %v1238_v0  ;;  %v351_v0 = vld [vmem:[%s1464_s4 + $0x30] sm:$0xff] }
  0xc5   : > { %v377_v40 = vmul.f32 %v1275_v33, %v369_v34  ;;  %v327_v42 = vmul.f32 %v1275_v33, %v286_v1  ;;  %v368_v1 = vpack.c.bf16 %v360_v62, %v359_v61 }
  0xc7   : > { %v1279_v36 = vpop.eup %1017  ;;  %919 = vmatprep.subr.bf16.mxu0 %v368_v1 }
  0xc8   : > { %v1281_v37 = vpop.eup %1019  ;;  %v380_v39 = vmul.f32 %v1279_v36, %v372_v32  ;;  %v330_v27 = vmul.f32 %v1279_v36, %v1240_v2 }
  0xc9   : > { %v378_v41 = vmul.f32 %v1281_v37, %v370_v35  ;;  %v328_v43 = vmul.f32 %v1281_v37, %v287_v5  ;;  %v355_v5 = vld [vmem:[%s1464_s4 + $0x50] sm:$0xff]  ;;  %v352_v35 = vld [vmem:[%s1464_s4 + $0x38] sm:$0xff] }
  0xca   : > { %v386_v45 = vpack.c.bf16 %v380_v39, %v379_v38  ;;  %v366_v7 = vpack.c.bf16 %v356_v6, %v355_v5  ;;  %v1345_v32 = vpack.c.bf16 %v330_v27, %v329_v31  ;;  %v350_v38 = vld [vmem:[%s1464_s4 + $0x28] sm:$0xff] }
  0xcb   : > { %v1291_v47 = vpop.eup %1021  ;;  %v385_v48 = vpack.c.bf16 %v378_v41, %v377_v40  ;;  %v1293_v49 = vpack.c.bf16 %v328_v43, %v327_v42  ;;  %v347_v40 = vld [vmem:[%s1464_s4 + $0x10] sm:$0xff]  ;;  %v348_v41 = vld [vmem:[%s1464_s4 + $0x18] sm:$0xff]  ;;  %v345_v43 = vld [vmem:[%s1464_s4] sm:$0xff] }
  0xcc   : > { %v1295_v50 = vpop.eup %1023  ;;  %v382_v51 = vmul.f32 %v1291_v47, %v374_v44  ;;  %v332_v29 = vmul.f32 %v1291_v47, %v1248_v8  ;;  %v362_v42 = vpack.c.bf16 %v348_v41, %v347_v40  ;;  %v346_v44 = vld [vmem:[%s1464_s4 + $0x8] sm:$0xff] }
  0xcd   : > { %895 = vmatprep.mubr.msk.bf16.mxu0 %vm389_vm1, %v385_v48  ;;  %911 = vmatprep.mubr.msk.bf16.mxu1 %vm294_vm0, %v1293_v49  ;;  %v381_v52 = vmul.f32 %v1295_v50, %v373_v46  ;;  %v331_v28 = vmul.f32 %v1295_v50, %v1250_v9  ;;  %v839_v48 = vld [vmem:[%s1463_s3] ss:$0 sm:$0xff] }
  0xce   : > { %896 = vmatmul.mubr.msk.bf16.vlgmr.msra.gmra.mxu0 %vm389_vm1, %v386_v45  ;;  %v361_v45 = vpack.c.bf16 %v346_v44, %v345_v43 }
  0xcf   : > { %v1305_v55 = vpop.eup %1025  ;;  %v387_v56 = vpack.c.bf16 %v382_v51, %v381_v52  ;;  %920 = vmatpush3.bf16.msra.mxu0 %v368_v1  ;;  %v1347_v34 = vpack.c.bf16 %v332_v29, %v331_v28 }
  0xd0   : > { %v1307_v57 = vpop.eup %1027  ;;  %v384_v58 = vmul.f32 %v1305_v55, %v376_v53  ;;  %921 = vmatprep.subr.bf16.mxu0 %v367_v4  ;;  %v334_v8 = vmul.f32 %v1305_v55, %v1256_v12  ;;  %v349_v12 = vld [vmem:[%s1464_s4 + $0x20] sm:$0xff] }
  0xd1   : > { %899 = vmatprep.mubr.msk.bf16.mxu0 %vm389_vm1, %v387_v56  ;;  %v383_v59 = vmul.f32 %v1307_v57, %v375_v54  ;;  %v333_v2 = vmul.f32 %v1307_v57, %v1258_v13  ;;  %v364_v13 = vpack.c.bf16 %v352_v35, %v351_v0  ;;  %v363_v39 = vpack.c.bf16 %v350_v38, %v349_v12  ;;  %v844_v0 = vld [vmem:[%s1465_s5] ss:$0 sm:$0xff] }
  0xd3   : > { %v388_v60 = vpack.c.bf16 %v384_v58, %v383_v59  ;;  %922 = vmatpush3.bf16.msra.mxu0 %v367_v4  ;;  %v1357_v9 = vpack.c.bf16 %v334_v8, %v333_v2 }
  0xd4   : > { %923 = vmatprep.subr.bf16.mxu0 %v366_v7 }
  0xd6   : > { %900 = vmatmul.mubr.msk.bf16.gmra.mxu0 %vm389_vm1, %v388_v60 }
  0xd7   : > { %924 = vmatpush3.bf16.msra.mxu0 %v366_v7 }
  0xd8   : > { %925 = vmatprep.subr.bf16.mxu0 %v365_v14 }
  0xdb   : > { %926 = vmatpush3.bf16.msra.mxu0 %v365_v14 }
  0xdc   : > { %927 = vmatprep.subr.bf16.mxu0 %v364_v13 }
  0xdf   : > { %928 = vmatpush3.bf16.msra.mxu0 %v364_v13 }
  0xe0   : > { %929 = vmatprep.subr.bf16.mxu0 %v363_v39 }
  0xe3   : > { %930 = vmatpush3.bf16.msra.mxu0 %v363_v39 }
  0xe4   : > { %931 = vmatprep.subr.bf16.mxu0 %v362_v42 }
  0xe7   : > { %932 = vmatpush3.bf16.msra.mxu0 %v362_v42 }
  0xe8   : > { %933 = vmatprep.subr.bf16.mxu0 %v361_v45 }
  0xeb   : > { %934 = vmatpush3.bf16.msra.mxu0 %v361_v45 }
 0x18e   : > { %v897_v15 = vpop.f32.mrf.mxu0 }
 0x190   : > { %v436_v16 = vpop.f32.mrf.mxu0 }
 0x192   : > { %v898_v17 = vpop.f32.mrf.mxu0 }
 0x193   : > { %v468_v25 = vpack.c.bf16 %v898_v17, %v897_v15 }
 0x194   : > { %v439_v18 = vpop.f32.mrf.mxu0 }
 0x195   : > { %v467_v26 = vpack.c.bf16 %v439_v18, %v436_v16 }
 0x196   : > { %v901_v19 = vpop.f32.mrf.mxu0 }
 0x198   : > { %v452_v20 = vpop.f32.mrf.mxu0 }
 0x19a   : > { %v902_v21 = vpop.f32.mrf.mxu0 }
 0x19b   : > { %v470_v22 = vpack.c.bf16 %v902_v21, %v901_v19 }
 0x19c   : > { %v455_v23 = vpop.f32.mrf.mxu0 }
 0x19d   : > { %v469_v24 = vpack.c.bf16 %v455_v23, %v452_v20  ;;  %903 = vmatprep.subr.bf16.mxu1 %v470_v22 }
 0x19e   : > { %904 = vmatpush3.bf16.msra.mxu1 %v470_v22 }
 0x19f   : > { %905 = vmatprep.subr.bf16.mxu1 %v469_v24 }
 0x1a2   : > { %906 = vmatpush3.bf16.msra.mxu1 %v469_v24 }
 0x1a3   : > { %907 = vmatprep.subr.bf16.mxu1 %v468_v25 }
 0x1a6   : > { %908 = vmatpush3.bf16.msra.mxu1 %v468_v25 }
 0x1a7   : > { %909 = vmatprep.subr.bf16.mxu1 %v467_v26 }
 0x1aa   : > { %910 = vmatpush3.bf16.msra.mxu1 %v467_v26 }
 0x1ad   : > { %912 = vmatmul.mubr.msk.bf16.vlgmr.msra.gmra.mxu1 %vm294_vm0, %v1345_v32 }
 0x1ae   : > { %915 = vmatprep.mubr.msk.bf16.mxu1 %vm294_vm0, %v1347_v34 }
 0x1b5   : > { %916 = vmatmul.mubr.msk.bf16.gmra.mxu1 %vm294_vm0, %v1357_v9 }
 0x1b6   : > { %951 = vmatprep.mubr.msk.bf16.mxu1 %vm294_vm0, %v1293_v49 }
 0x26d   : > { %v913_v46 = vpop.f32.mrf.mxu1 }
 0x26e   : > { %v533_v52 = vadd.f32 %v913_v46, %v839_v48 }
 0x26f   : > { %v524_v49 = vpop.f32.mrf.mxu1 }
 0x270   : > { %v525_v51 = vadd.f32 %v839_v48, %v524_v49  ;;  %v557_v61 = vmax.f32 %v533_v52, 0.0 }
 0x271   : > { %v914_v53 = vpop.f32.mrf.mxu1 }
 0x272   : > { %v536_v54 = vadd.f32 %v914_v53, %v839_v48  ;;  %v555_v58 = vmax.f32 %v525_v51, 0.0  ;;  %v565_v7 = vmul.f32 %v1271_v30, %v557_v61 }
 0x273   : > { %v527_v56 = vpop.f32.mrf.mxu1 }
 0x274   : > { %v558_v59 = vmax.f32 %v536_v54, 0.0  ;;  %v528_v60 = vadd.f32 %v839_v48, %v527_v56  ;;  %v563_v4 = vmul.f32 %v1275_v33, %v555_v58 }
 0x275   : > { %v917_v62 = vpop.f32.mrf.mxu1 }
 0x276   : > { %v556_v63 = vmax.f32 %v528_v60, 0.0  ;;  %v566_v1 = vmul.f32 %v1279_v36, %v558_v59  ;;  %v549_v10 = vadd.f32 %v917_v62, %v839_v48 }
 0x277   : > { %v540_v3 = vpop.f32.mrf.mxu1 }
 0x278   : > { %v564_v5 = vmul.f32 %v1281_v37, %v556_v63  ;;  %v541_v6 = vadd.f32 %v839_v48, %v540_v3  ;;  %v572_v16 = vpack.c.bf16 %v566_v1, %v565_v7  ;;  %v561_v21 = vmax.f32 %v549_v10, 0.0 }
 0x279   : > { %v918_v11 = vpop.f32.mrf.mxu1 }
 0x27a   : > { %v552_v14 = vadd.f32 %v918_v11, %v839_v48  ;;  %v571_v15 = vpack.c.bf16 %v564_v5, %v563_v4  ;;  %v559_v18 = vmax.f32 %v541_v6, 0.0  ;;  %v569_v30 = vmul.f32 %v1307_v57, %v561_v21 }
 0x27b   : > { %v543_v17 = vpop.f32.mrf.mxu1 }
 0x27c   : > { %v562_v19 = vmax.f32 %v552_v14, 0.0  ;;  %v544_v20 = vadd.f32 %v839_v48, %v543_v17  ;;  %935 = vmatprep.mubr.bf16.mxu0 %v571_v15  ;;  %v567_v37 = vmul.f32 %v1295_v50, %v559_v18 }
 0x27d   : > { %936 = vmatmul.mubr.bf16.vlgmr.msra.gmra.mxu0 %v572_v16 }
 0x27e   : > { %v560_v36 = vmax.f32 %v544_v20, 0.0  ;;  %v570_v33 = vmul.f32 %v1305_v55, %v562_v19 }
 0x280   : > { %v568_v22 = vmul.f32 %v1291_v47, %v560_v36  ;;  %v574_v24 = vpack.c.bf16 %v570_v33, %v569_v30 }
 0x282   : > { %v573_v23 = vpack.c.bf16 %v568_v22, %v567_v37 }
 0x284   : > { %939 = vmatprep.mubr.bf16.mxu0 %v573_v23 }
 0x285   : > { %940 = vmatmul.mubr.bf16.gmra.mxu0 %v574_v24 }
 0x33d   : > { %v937_v25 = vpop.f32.mrf.mxu0 }
 0x33f   : > { %v609_v26 = vpop.f32.mrf.mxu0 }
 0x341   : > { %v938_v27 = vpop.f32.mrf.mxu0 }
 0x342   : > { %v641_v47 = vpack.c.bf16 %v938_v27, %v937_v25 }
 0x343   : > { %v612_v28 = vpop.f32.mrf.mxu0 }
 0x344   : > { %v640_v57 = vpack.c.bf16 %v612_v28, %v609_v26 }
 0x345   : > { %v941_v29 = vpop.f32.mrf.mxu0 }
 0x347   : > { %v625_v31 = vpop.f32.mrf.mxu0 }
 0x349   : > { %v942_v2 = vpop.f32.mrf.mxu0 }
 0x34a   : > { %v643_v8 = vpack.c.bf16 %v942_v2, %v941_v29 }
 0x34b   : > { %v628_v55 = vpop.f32.mrf.mxu0 }
 0x34c   : > { %v642_v50 = vpack.c.bf16 %v628_v55, %v625_v31  ;;  %943 = vmatprep.subr.bf16.mxu1 %v643_v8 }
 0x34d   : > { %944 = vmatpush3.bf16.msra.mxu1 %v643_v8 }
 0x34e   : > { %945 = vmatprep.subr.bf16.mxu1 %v642_v50 }
 0x351   : > { %946 = vmatpush3.bf16.msra.mxu1 %v642_v50 }
 0x352   : > { %947 = vmatprep.subr.bf16.mxu1 %v641_v47 }
 0x355   : > { %948 = vmatpush3.bf16.msra.mxu1 %v641_v47 }
 0x356   : > { %949 = vmatprep.subr.bf16.mxu1 %v640_v57 }
 0x359   : > { %950 = vmatpush3.bf16.msra.mxu1 %v640_v57 }
 0x35c   : > { %952 = vmatmul.mubr.msk.bf16.vlgmr.msra.gmra.mxu1 %vm294_vm0, %v1345_v32 }
 0x35d   : > { %955 = vmatprep.mubr.msk.bf16.mxu1 %vm294_vm0, %v1347_v34 }
 0x364   : > { %956 = vmatmul.mubr.msk.bf16.gmra.mxu1 %vm294_vm0, %v1357_v9 }
 0x41c   : > { %v953_v35 = vpop.f32.mrf.mxu1 }
 0x41d   : > { %v694_v13 = vadd.f32 %v953_v35, %v844_v0 }
 0x41e   : > { %v685_v12 = vpop.f32.mrf.mxu1 }
 0x41f   : > { %718 = vst [vmem:[%s274_s18 + $0x10] sm:$0xff] %v694_v13  ;;  %v686_v32 = vadd.f32 %v844_v0, %v685_v12 }
 0x420   : > { %v954_v38 = vpop.f32.mrf.mxu1 }
 0x421   : > { %716 = vst [vmem:[%s274_s18] sm:$0xff] %v686_v32  ;;  %v697_v34 = vadd.f32 %v954_v38, %v844_v0 }
 0x422   : > { %v688_v39 = vpop.f32.mrf.mxu1 }
 0x423   : > { %719 = vst [vmem:[%s274_s18 + $0x18] sm:$0xff] %v697_v34  ;;  %v689_v9 = vadd.f32 %v844_v0, %v688_v39 }
 0x424   : > { %v957_v40 = vpop.f32.mrf.mxu1 }
 0x425   : > { %717 = vst [vmem:[%s274_s18 + $0x8] sm:$0xff] %v689_v9  ;;  %v710_v41 = vadd.f32 %v957_v40, %v844_v0 }
 0x426   : > { %v701_v42 = vpop.f32.mrf.mxu1 }
 0x427   : > { %722 = vst [vmem:[%s274_s18 + $0x30] sm:$0xff] %v710_v41  ;;  %v702_v43 = vadd.f32 %v844_v0, %v701_v42 }
 0x428   : > { %v958_v44 = vpop.f32.mrf.mxu1 }
 0x429   : > { %720 = vst [vmem:[%s274_s18 + $0x20] sm:$0xff] %v702_v43  ;;  %v713_v45 = vadd.f32 %v958_v44, %v844_v0 }
 0x42a   : > { %v704_v46 = vpop.f32.mrf.mxu1 }
 0x42b   : > { %723 = vst [vmem:[%s274_s18 + $0x38] sm:$0xff] %v713_v45  ;;  %v705_v48 = vadd.f32 %v844_v0, %v704_v46 }
 0x42d   : > { %721 = vst [vmem:[%s274_s18 + $0x28] sm:$0xff] %v705_v48 }
 0x42e   : > { %1068 = shalt.err (!%p1065_p0)
}
 0x42f   : > { %s1069_s13 = scalar_lea.hbm %s1416_s29, 1024  ;;  %s1073_s16 = scalar_lea.hbm %s1466_s6, 4096 }
 0x430   : > { %p1070_p1 = scmp.ne.s32.totalorder %s1416_s29, %s1069_s13  ;;  %p1074_p4 = scmp.lt.s32.totalorder %s1416_s29, %s1466_s6 }
 0x431   : > { %p1075_p7 = scmp.lt.s32.totalorder %s1073_s16, %s1069_s13 }
 0x432   : > { %p1071_p2 = pnand %p1070_p1, %p1200_p5 }
 0x433   : > { %p1076_p8 = por %p1075_p7, %p1074_p4 }
 0x434   : > { %p1072_p3 = pneg %p1071_p2 }
 0x436   : > { %p1077_p6 = pnand %p1076_p8, %p1072_p3 }
 0x438   : > { %1080 = shalt.err (!%p1077_p6)
}
 0x439   : > { %s1125_s20 = smov 128   ;;  %s1126_s26 = smov 8  }
 0x43a   : > { %963 = dma.vmem_to_hbm [thread:$0]  (%p1200_p5), %s1411_s19, 1024, %s1416_s29, %s1420_s9, %s1125_s20, %s1125_s20, %s1126_s26  }
 0x43b PF: > { %p975_p9 = scmp.ge.s32.totalorder %s1119_s24, 2  ;;  %s753_s28 = sand.u32 1, %s1107_s21  }
 0x43c   : > { %p1470_p10 = scmp.ne.s32.totalorder %s1468_s8, 0  ;;  %s754_s25 = scalar_lea.sflag [#allocation4], %s753_s28 }
 0x43e   : > { %p970_p11 = pnand %p975_p9, %p1470_p10 }
 0x440   : > { %p971_p12 = pneg %p970_p11 }
 0x442   : > { %1102 = dma.done.wait (%p971_p12), %s754_s25, 1024  }
 0x443   : > { %1104 = vsyncadd (%p971_p12), %s754_s25, 4294966272  ;;  %p17_p13 = scmp.ge.s32.totalorder %s1187_s27, 6   ;;  %s1471_s21 = smov %s1111_s22 }
 0x444   : > { %s1472_s22 = smov %s1115_s23  ;;  %s1473_s23 = smov %s1198_s30 }
 0x445   : > { %s1474_s24 = smov %s1187_s27  ;;  %19 = sbr.rel (!%p17_p13) target bundleno = 4 (0x4), region = 87 }
 0x44a   :  { %759 = vsyncpa [#allocation3], 1 }
 0x44b   :  { %761 = vsyncpa [#allocation3 + $0x1], 1 }
 0x44c   :  { %762 = vsyncpa [#allocation4], 1 }
 0x44d   :  { %764 = vsyncpa [#allocation4 + $0x1], 1 }

</bundles_post_ra>
